<compile_context>
chip_gen: v5e
topology: v5e:2x2
jax: 0.10.0
libtpu: 0.0.40
codegen_flags: <defaults>
</compile_context>

<pallas_src>
import functools

import jax
import jax.numpy as jnp
from jax.experimental import pallas as pl
from jax.experimental.pallas import tpu as pltpu

NEG_SLOPE = 0.2            # GATConv default LeakyReLU negative_slope
NEG_INF = -1e30            # large negative instead of -inf (keeps exp/max NaN-free)
VMEM_LIMIT = 48 * 1024 * 1024   # fits under v7x's 64 MiB physical VMEM


# ---------------------------------------------------------------------------
# helpers
# ---------------------------------------------------------------------------
def _round_up(x, m):
    return (x + m - 1) // m * m


def _pad2(a, rows, cols):
    return jnp.pad(a, ((0, rows - a.shape[0]), (0, cols - a.shape[1])))


def _att_pack(att_src, att_dst, f_pad):
    """[1,F] src/dst attention vectors -> bf16 [f_pad, 128] (col0=src, col1=dst)."""
    p = jnp.zeros((f_pad, 128), jnp.float32)
    p = p.at[:att_src.shape[1], 0].set(att_src[0])
    p = p.at[:att_dst.shape[1], 1].set(att_dst[0])
    return p.astype(jnp.bfloat16)


def _pick_tiles(n):
    """Return (tm, ts, n_pad): target tile, source tile, padded node count."""
    n_pad0 = _round_up(max(n, 8), 128)
    if n_pad0 <= 128:                      # tiny graph: single tile
        return n_pad0, n_pad0, n_pad0
    if n_pad0 <= 2048:
        tm = _round_up(n_pad0 // 2, 128)   # exactly 2 row tiles -> both TCs busy
        n_pad = 2 * tm
    else:
        tm = 1024                          # big tiles amortize ~0.35us step cost
        n_pad = _round_up(n_pad0, tm)
    if n_pad <= 1024:
        ts = n_pad
    elif n_pad % 1024 == 0:
        ts = 1024
    else:
        ts = tm                            # tm always divides n_pad
    return tm, ts, n_pad


def _block_occupancy(mask, tm, ts):
    """Compacted per-row-tile list of occupied (tm, ts) source blocks + counts.

    Tail entries repeat the last occupied index so consecutive grid steps keep the
    same block index (Pallas skips the re-fetch) while pl.when skips the compute.
    Needs a concrete mask (grid extent depends on graph sparsity).
    """
    n_pad = mask.shape[0]
    nt, ns = n_pad // tm, n_pad // ts
    occ = mask.reshape(nt, tm, ns, ts).astype(jnp.int32).max(axis=(1, 3)) > 0
    counts = occ.sum(axis=1).astype(jnp.int32)            # >= 1 (self loops)
    max_occ = int(jnp.max(counts))
    order = jnp.argsort(jnp.logical_not(occ), axis=1).astype(jnp.int32)
    take = jnp.minimum(jnp.arange(max_occ, dtype=jnp.int32)[None, :],
                       counts[:, None] - 1)
    tile_list = jnp.take_along_axis(order, take, axis=1).astype(jnp.int32)
    return tile_list, counts


# ---------------------------------------------------------------------------
# Kernel 1: per-layer projection  h = x @ W  and  a = h @ [att_src | att_dst]
# ---------------------------------------------------------------------------
def _gat_proj_kernel(x_ref, w_ref, att_ref, h_ref, a_ref, *, sum_col):
    h = jnp.dot(x_ref[...].astype(jnp.bfloat16), w_ref[...],
                preferred_element_type=jnp.float32)            # [TM, F] f32
    hb = h.astype(jnp.bfloat16)
    if sum_col is not None:
        # Write 1.0 into a guaranteed-spare padded column so the attention kernel
        # gets the softmax row-sum for free from its p @ h MXU op.
        col = jax.lax.broadcasted_iota(jnp.int32, hb.shape, 1)
        hb = jnp.where(col == sum_col, 1.0, hb)
    h_ref[...] = hb
    # att_ref is bf16 [F, 128]: col 0 = att_src, col 1 = att_dst, rest zero.
    a_ref[...] = jnp.dot(hb, att_ref[...], preferred_element_type=jnp.float32)


def _gat_project(x, w, att_pack, tm, *, sum_col):
    n_pad, f_in = x.shape
    f_out = w.shape[1]
    kernel = functools.partial(_gat_proj_kernel, sum_col=sum_col)
    return pl.pallas_call(
        kernel,
        out_shape=(jax.ShapeDtypeStruct((n_pad, f_out), jnp.bfloat16),
                   jax.ShapeDtypeStruct((n_pad, 128), jnp.float32)),
        grid_spec=pltpu.PrefetchScalarGridSpec(
            num_scalar_prefetch=0,
            grid=(n_pad // tm,),
            in_specs=[pl.BlockSpec((tm, f_in), lambda i: (i, 0)),
                      pl.BlockSpec((f_in, f_out), lambda i: (0, 0)),
                      pl.BlockSpec((f_out, 128), lambda i: (0, 0))],
            out_specs=[pl.BlockSpec((tm, f_out), lambda i: (i, 0)),
                       pl.BlockSpec((tm, 128), lambda i: (i, 0))]),
        compiler_params=pltpu.CompilerParams(
            dimension_semantics=("parallel",),
            vmem_limit_bytes=VMEM_LIMIT),
    )(x, w, att_pack)


# ---------------------------------------------------------------------------
# Kernel 2: masked-softmax attention + aggregation (flash-style, block-sparse)
# ---------------------------------------------------------------------------
def _gat_attn_kernel(lst_ref, cnt_ref, mask_ref, h_ref, asrc_ref, adst_ref,
                     bias_ref, out_ref, m_sc, l_sc, acc_sc,
                     *, epilogue, valid_dim, sum_col):
    i = pl.program_id(0)
    j = pl.program_id(1)

    @pl.when(j == 0)
    def _():
        m_sc[...] = jnp.full_like(m_sc, NEG_INF)
        l_sc[...] = jnp.zeros_like(l_sc)
        acc_sc[...] = jnp.zeros_like(acc_sc)

    # Only the first cnt[i] list entries are occupied source blocks; tail steps
    # repeat the previous block index (no new DMA) and are skipped here.
    @pl.when(j < cnt_ref[i])
    def _():
        # e[i, j] = LeakyReLU(a_dst[i] + a_src[j]); masked entries -> NEG_INF
        e = adst_ref[...] + asrc_ref[...]                      # [TM, TS] f32
        e = jnp.maximum(e, NEG_SLOPE * e)                      # LeakyReLU
        e = jnp.where(mask_ref[...] != 0, e, NEG_INF)          # int8 adjacency

        # online softmax over incoming edges (source axis)
        m_prev = m_sc[...]
        m_new = jnp.maximum(m_prev, jnp.max(e, axis=1, keepdims=True))
        alpha = jnp.exp(m_prev - m_new)
        p = jnp.exp(e - m_new).astype(jnp.bfloat16)            # masked -> 0
        acc_sc[...] = alpha * acc_sc[...] + jnp.dot(
            p, h_ref[...], preferred_element_type=jnp.float32)
        if sum_col is None:                                    # fallback row-sum
            l_sc[...] = alpha * l_sc[...] + jnp.sum(
                p.astype(jnp.float32), axis=1, keepdims=True)
        m_sc[...] = m_new

    @pl.when(j == pl.num_programs(1) - 1)
    def _():
        acc = acc_sc[...]
        if sum_col is not None:
            # Row-sum of p rode along in h's ones column via the MXU.
            col = jax.lax.broadcasted_iota(jnp.int32, acc.shape, 1)
            denom = jnp.sum(jnp.where(col == sum_col, acc, 0.0),
                            axis=1, keepdims=True)
        else:
            denom = l_sc[...]
        if epilogue == "relu":
            out = acc * pl.reciprocal(denom, approx=True) + bias_ref[...]
            out = jnp.maximum(out, 0.0)
        else:  # exact divide feeding log_softmax over the unpadded lanes
            out = acc / denom + bias_ref[...]
            col = jax.lax.broadcasted_iota(jnp.int32, out.shape, 1)
            z = jnp.where(col < valid_dim, out, NEG_INF)
            zmax = jnp.max(z, axis=1, keepdims=True)
            z = z - zmax
            lse = jnp.log(jnp.sum(jnp.exp(z), axis=1, keepdims=True))
            out = z - lse
        out_ref[...] = out.astype(out_ref.dtype)


def _gat_attention(tile_list, counts, mask, h, a_src_row, a_dst_col, bias,
                   tm, ts, *, epilogue, valid_dim, sum_col, out_dtype):
    n_pad = mask.shape[0]
    f = h.shape[1]
    max_occ = tile_list.shape[1]
    kernel = functools.partial(_gat_attn_kernel, epilogue=epilogue,
                               valid_dim=valid_dim, sum_col=sum_col)
    return pl.pallas_call(
        kernel,
        out_shape=jax.ShapeDtypeStruct((n_pad, f), out_dtype),
        grid_spec=pltpu.PrefetchScalarGridSpec(
            num_scalar_prefetch=2,        # tile_list, counts -> SMEM
            grid=(n_pad // tm, max_occ),
            in_specs=[
                pl.BlockSpec((tm, ts), lambda i, j, lst, cnt: (i, lst[i, j])),
                pl.BlockSpec((ts, f), lambda i, j, lst, cnt: (lst[i, j], 0)),
                pl.BlockSpec((1, ts), lambda i, j, lst, cnt: (0, lst[i, j])),
                pl.BlockSpec((tm, 1), lambda i, j, lst, cnt: (i, 0)),
                pl.BlockSpec((1, f), lambda i, j, lst, cnt: (0, 0)),
            ],
            out_specs=pl.BlockSpec((tm, f), lambda i, j, lst, cnt: (i, 0)),
            scratch_shapes=[pltpu.VMEM((tm, 1), jnp.float32),     # running max
                            pltpu.VMEM((tm, 1), jnp.float32),     # fallback denom
                            pltpu.VMEM((tm, f), jnp.float32)]),   # running acc
        compiler_params=pltpu.CompilerParams(
            dimension_semantics=("parallel", "arbitrary"),
            vmem_limit_bytes=VMEM_LIMIT),
    )(tile_list, counts, mask, h, a_src_row, a_dst_col, bias)


# ---------------------------------------------------------------------------
# Wrapper / glue
# ---------------------------------------------------------------------------
def gatv1_forward(x, edge_index, params):
    """x: [N, in_dim] f32, edge_index: [2, E] int32 (row 0 = src, row 1 = tgt).

    Must be called with concrete (non-traced) edge_index: the block-sparse grid
    extent depends on graph sparsity.
    """
    n, in_dim = x.shape
    hidden_dim = params["w1"].shape[1]
    out_dim = params["w2"].shape[1]

    tm, ts, n_pad = _pick_tiles(n)
    f_in = _round_up(in_dim, 128)
    f_hid = _round_up(hidden_dim, 128)
    f_out = _round_up(out_dim, 128)

    # int8 adjacency (1 = edge j->i, including self loops).
    # TODO(synk): duplicate edges collapse in the dense mask (PyG softmaxes each
    # duplicate separately); very large sparse graphs want a CSR-gather kernel.
    src, tgt = edge_index[0], edge_index[1]
    mask = jnp.zeros((n_pad, n_pad), jnp.int8)
    mask = mask.at[tgt, src].set(1)
    diag = jnp.arange(n_pad)
    mask = mask.at[diag, diag].set(1)          # add_self_loops (also pad rows)

    tile_list, counts = _block_occupancy(mask, tm, ts)

    xp = _pad2(x, n_pad, f_in).astype(jnp.bfloat16)
    w1 = _pad2(params["w1"], f_in, f_hid).astype(jnp.bfloat16)
    w2 = _pad2(params["w2"], f_hid, f_out).astype(jnp.bfloat16)
    b1 = _pad2(params["b1"], 1, f_hid)
    b2 = _pad2(params["b2"], 1, f_out)
    att1 = _att_pack(params["att_src1"], params["att_dst1"], f_hid)
    att2 = _att_pack(params["att_src2"], params["att_dst2"], f_out)

    sum1 = hidden_dim if hidden_dim < f_hid else None   # spare padded column
    sum2 = out_dim if out_dim < f_out else None

    # ---- layer 1: project, attend + aggregate, ReLU (bf16 output) ----
    h1b, a1 = _gat_project(xp, w1, att1, tm, sum_col=sum1)
    h1 = _gat_attention(tile_list, counts, mask, h1b,
                        a1[:, 0].reshape(1, n_pad), a1[:, 1:2], b1, tm, ts,
                        epilogue="relu", valid_dim=hidden_dim, sum_col=sum1,
                        out_dtype=jnp.bfloat16)

    # ---- layer 2: project, attend + aggregate, log_softmax (f32 output) ----
    h2b, a2 = _gat_project(h1, w2, att2, tm, sum_col=sum2)
    out = _gat_attention(tile_list, counts, mask, h2b,
                         a2[:, 0].reshape(1, n_pad), a2[:, 1:2], b2, tm, ts,
                         epilogue="log_softmax", valid_dim=out_dim, sum_col=sum2,
                         out_dtype=jnp.float32)

    return out[:n, :out_dim]


def init_params(key, in_dim, hidden_dim, out_dim):
    ks = jax.random.split(key, 6)

    def glorot(k, shape):
        fan_in, fan_out = shape[0], shape[-1]
        lim = (6.0 / (fan_in + fan_out)) ** 0.5
        return jax.random.uniform(k, shape, jnp.float32, -lim, lim)

    return {
        "w1":       glorot(ks[0], (in_dim, hidden_dim)),
        "att_src1": glorot(ks[1], (1, hidden_dim)),
        "att_dst1": glorot(ks[2], (1, hidden_dim)),
        "b1":       jnp.zeros((1, hidden_dim), jnp.float32),
        "w2":       glorot(ks[3], (hidden_dim, out_dim)),
        "att_src2": glorot(ks[4], (1, out_dim)),
        "att_dst2": glorot(ks[5], (1, out_dim)),
        "b2":       jnp.zeros((1, out_dim), jnp.float32),
    }


def _reference(x, edge_index, params):
    """Plain-JAX dense reference (bf16-quantized weights/att to match kernel)."""
    n = x.shape[0]
    src, tgt = edge_index[0], edge_index[1]
    adj = jnp.zeros((n, n), jnp.float32).at[tgt, src].set(1.0)
    adj = adj.at[jnp.arange(n), jnp.arange(n)].set(1.0)

    q = lambda a: a.astype(jnp.bfloat16).astype(jnp.float32)

    def layer(h_in, w, a_s, a_d, b):
        h = h_in @ w
        e = (h @ a_d.T) + (h @ a_s.T).T
        e = jnp.where(e > 0, e, NEG_SLOPE * e)
        e = jnp.where(adj > 0, e, NEG_INF)
        e = e - jnp.max(e, axis=1, keepdims=True)
        p = jnp.exp(e)
        p = p / jnp.sum(p, axis=1, keepdims=True)
        return p @ h + b

    h1 = jnp.maximum(layer(x, q(params["w1"]), q(params["att_src1"]),
                           q(params["att_dst1"]), params["b1"]), 0.0)
    h2 = layer(h1, q(params["w2"]), q(params["att_src2"]),
               q(params["att_dst2"]), params["b2"])
    return jax.nn.log_softmax(h2, axis=1)


if __name__ == "__main__":
    key = jax.random.PRNGKey(0)
    k_x, k_e, k_p = jax.random.split(key, 3)

    N, in_dim, hidden_dim, out_dim, E = 16, 8, 32, 4, 40

    x = jax.random.normal(k_x, (N, in_dim), jnp.float32)
    edge_index = jax.random.randint(k_e, (2, E), 0, N, jnp.int32)
    params = init_params(k_p, in_dim, hidden_dim, out_dim)

    out = jax.block_until_ready(gatv1_forward(x, edge_index, params))
    ref = jax.block_until_ready(_reference(x, edge_index, params))

    assert out.shape == (N, out_dim)
    assert bool(jnp.all(jnp.isfinite(out)))
    assert bool(jnp.allclose(out, ref, atol=1e-1, rtol=1e-1)), float(
        jnp.max(jnp.abs(out - ref)))
    print("KERNEL_OK")
</pallas_src>

<mosaic_0001>
module attributes {stable_mosaic.version = 11 : i64} {
  func.func @_gat_proj_kernel(%arg0: i32, %arg1: memref<128x128xbf16, #tpu.memory_space<vmem>>, %arg2: memref<128x128xbf16, #tpu.memory_space<vmem>>, %arg3: memref<128x128xbf16, #tpu.memory_space<vmem>>, %arg4: memref<128x128xbf16, #tpu.memory_space<vmem>>, %arg5: memref<128x128xf32, #tpu.memory_space<vmem>>) attributes {dimension_semantics = [#tpu.dimension_semantics<parallel>], iteration_bounds = array<i64: 1>, scalar_prefetch = 0 : i64, scratch_operands = 0 : i64, tpu.core_type = #tpu.core_type<tc>, window_params = [{transform_indices = @transform_0, window_bounds = array<i64: 128, 128>}, {pipeline_mode = #tpu.pipeline_mode<synchronous>, transform_indices = @transform_1, window_bounds = array<i64: 128, 128>}, {pipeline_mode = #tpu.pipeline_mode<synchronous>, transform_indices = @transform_2, window_bounds = array<i64: 128, 128>}, {transform_indices = @transform_3, window_bounds = array<i64: 128, 128>}, {transform_indices = @transform_4, window_bounds = array<i64: 128, 128>}]} {
    %c0 = arith.constant 0 : index
    %c0_0 = arith.constant 0 : index
    %0 = vector.load %arg1[%c0, %c0_0] : memref<128x128xbf16, #tpu.memory_space<vmem>>, vector<128x128xbf16>
    %c0_1 = arith.constant 0 : index
    %c0_2 = arith.constant 0 : index
    %1 = vector.load %arg2[%c0_1, %c0_2] : memref<128x128xbf16, #tpu.memory_space<vmem>>, vector<128x128xbf16>
    %cst = arith.constant dense<0.000000e+00> : vector<128x128xf32>
    %2 = tpu.matmul %0, %1, %cst {dimension_numbers = #tpu.dot_dimension_numbers<[1], [0], [0], [1], [0, 0, 1, 1], [], []>} : vector<128x128xbf16>, vector<128x128xbf16>, vector<128x128xf32> -> vector<128x128xf32>
    %3 = arith.truncf %2 : vector<128x128xf32> to vector<128x128xbf16>
    %4 = tpu.iota {dimensions = array<i32: 1>} : vector<128x128xi32>
    %c32_i32 = arith.constant 32 : i32
    %5 = vector.broadcast %c32_i32 : i32 to vector<128x128xi32>
    %6 = arith.cmpi eq, %4, %5 : vector<128x128xi32>
    %cst_3 = arith.constant 1.000000e+00 : f32
    %7 = arith.truncf %cst_3 : f32 to bf16
    %8 = vector.broadcast %7 : bf16 to vector<128x128xbf16>
    %9 = arith.select %6, %8, %3 : vector<128x128xi1>, vector<128x128xbf16>
    %c0_4 = arith.constant 0 : index
    %c0_5 = arith.constant 0 : index
    %10 = vector.load %arg4[%c0_4, %c0_5] : memref<128x128xbf16, #tpu.memory_space<vmem>>, vector<128x128xbf16>
    tpu.vector_store %arg4[%c0_4, %c0_5], %9 {strides = array<i32>} : memref<128x128xbf16, #tpu.memory_space<vmem>>, vector<128x128xbf16>,
    %c0_6 = arith.constant 0 : index
    %c0_7 = arith.constant 0 : index
    %11 = vector.load %arg3[%c0_6, %c0_7] : memref<128x128xbf16, #tpu.memory_space<vmem>>, vector<128x128xbf16>
    %cst_8 = arith.constant dense<0.000000e+00> : vector<128x128xf32>
    %12 = tpu.matmul %9, %11, %cst_8 {dimension_numbers = #tpu.dot_dimension_numbers<[1], [0], [0], [1], [0, 0, 1, 1], [], []>} : vector<128x128xbf16>, vector<128x128xbf16>, vector<128x128xf32> -> vector<128x128xf32>
    %c0_9 = arith.constant 0 : index
    %c0_10 = arith.constant 0 : index
    %13 = vector.load %arg5[%c0_9, %c0_10] : memref<128x128xf32, #tpu.memory_space<vmem>>, vector<128x128xf32>
    tpu.vector_store %arg5[%c0_9, %c0_10], %12 {strides = array<i32>} : memref<128x128xf32, #tpu.memory_space<vmem>>, vector<128x128xf32>,
    return
  }
  func.func @transform_0(%arg0: i32) -> (i32, i32) {
    %c0_i32 = arith.constant 0 : i32
    %c0_i32_0 = arith.constant 0 : i32
    return %arg0, %c0_i32 : i32, i32
  }
  func.func @transform_1(%arg0: i32) -> (i32, i32) {
    %c0_i32 = arith.constant 0 : i32
    %c0_i32_0 = arith.constant 0 : i32
    %c0_i32_1 = arith.constant 0 : i32
    return %c0_i32, %c0_i32_0 : i32, i32
  }
  func.func @transform_2(%arg0: i32) -> (i32, i32) {
    %c0_i32 = arith.constant 0 : i32
    %c0_i32_0 = arith.constant 0 : i32
    %c0_i32_1 = arith.constant 0 : i32
    return %c0_i32, %c0_i32_0 : i32, i32
  }
  func.func @transform_3(%arg0: i32) -> (i32, i32) {
    %c0_i32 = arith.constant 0 : i32
    %c0_i32_0 = arith.constant 0 : i32
    return %arg0, %c0_i32 : i32, i32
  }
  func.func @transform_4(%arg0: i32) -> (i32, i32) {
    %c0_i32 = arith.constant 0 : i32
    %c0_i32_0 = arith.constant 0 : i32
    return %arg0, %c0_i32 : i32, i32
  }
}

</mosaic_0001>

<bundles_post_ra>
// kernel: tpu_custom_call.1
= control target key start
LH: loop header
LB: loop body
LE: loop exit
PB: predicated region body
PF: predicated region fallthrough
CT: control target
= control target key end

     0   :  { %10 = vsyncpa [#allocation3], 0  ;;  %s880_s0 = inlined_call_operand.hbm [shape: bf16[128,128], index: 0, kind: input, shape index: {}]   ;;  %s881_s1 = inlined_call_operand.hbm [shape: bf16[128,128], index: 1, kind: input, shape index: {}]   ;;  %s882_s2 = inlined_call_operand.hbm [shape: bf16[128,128], index: 2, kind: input, shape index: {}]   ;;  %s883_s3 = inlined_call_operand.hbm [shape: bf16[128,128], index: 3, kind: output, shape index: {0}]   ;;  %s884_s4 = inlined_call_operand.hbm [shape: f32[128,128], index: 4, kind: output, shape index: {1}]  }
   0x1   :  { %11 = vsyncpa [#allocation6], 0 }
   0x2   :  { %12 = vsyncpa [#allocation4], 0 }
   0x3   :  { %13 = vsyncpa [#allocation10], 0  ;;  %s31_s17 = sshll.u32 %s881_s1, 4  ;;  %s783_s18 = smov [#allocation5]   ;;  %s32_s17 = int_to_ptr.hbm [resolvable:$true] %s31_s17 }
   0x4   :  { %s33_s19 = sshll.u32 %s783_s18, 4  ;;  %s18_s22 = sshll.u32 %s880_s0, 4  ;;  %s34_s19 = int_to_ptr.vmem [resolvable:$true] %s33_s19  ;;  %s19_s22 = int_to_ptr.hbm [resolvable:$true] %s18_s22 }
   0x5   :  { %s784_s23 = smov 64   ;;  %s785_s24 = smov 4  }
   0x6   :  { %39 = dma.hbm_to_vmem [thread:$0]  %s32_s17, 1024, %s34_s19, [#allocation6], %s784_s23, %s784_s23, %s785_s24  }
   0x7   :  { %s786_s25 = smov [#allocation2]   ;;  %s44_s1 = sshll.u32 %s882_s2, 4  ;;  %s45_s1 = int_to_ptr.hbm [resolvable:$true] %s44_s1 }
   0x8   :  { %s20_s26 = sshll.u32 %s786_s25, 4  ;;  %s787_s0 = smov [#allocation7]   ;;  %s21_s26 = int_to_ptr.vmem [resolvable:$true] %s20_s26 }
   0x9   :  { %26 = dma.hbm_to_vmem [thread:$0]  %s19_s22, 1024, %s21_s26, [#allocation3], %s784_s23, %s784_s23, %s785_s24  }
   0xa   :  { %s46_s29 = sshll.u32 %s787_s0, 4  ;;  %s47_s29 = int_to_ptr.vmem [resolvable:$true] %s46_s29 }
   0xb   :  { %52 = dma.hbm_to_vmem [thread:$0]  %s45_s1, 1024, %s47_s29, [#allocation6], %s784_s23, %s784_s23, %s785_s24  }
   0xc   :  { %775 = dma.done.wait [#allocation3], 1024  }
   0xd   :  { %776 = vsyncadd [#allocation3], 4294966272 }
   0xe   :  { %777 = dma.done.wait [#allocation6], 2048  }
   0xf   :  { %778 = vsyncadd [#allocation6], 4294965248  ;;  %v621_v0 = vld [vmem:[#allocation5 + $0x38] sm:$0xff]  ;;  %v620_v1 = vld [vmem:[#allocation5 + $0x30] sm:$0xff]  ;;  %v259_v24 = vlaneseq  ;;  %s788_s2 = smov [#allocation8]   ;;  %s478_s7 = sshll.u32 %s883_s3, 4  ;;  %s479_s7 = int_to_ptr.hbm [resolvable:$true] %s478_s7 }
  0x10   :  { %194 = vmatpush.bf16.msra.mxu0 %v621_v0  ;;  %630 = vmatpush.bf16.msra.mxu2 %v621_v0  ;;  %v619_v2 = vld [vmem:[#allocation5 + $0x28] sm:$0xff]  ;;  %v618_v3 = vld [vmem:[#allocation5 + $0x20] sm:$0xff]  ;;  %v617_v4 = vld [vmem:[#allocation5 + $0x18] sm:$0xff]  ;;  %s476_s30 = sshll.u32 %s788_s2, 4  ;;  %s789_s3 = smov [#allocation9]   ;;  %s477_s30 = int_to_ptr.vmem [resolvable:$true] %s476_s30 }
  0x11   :  { %v616_v5 = vld [vmem:[#allocation5 + $0x10] sm:$0xff]  ;;  %v615_v6 = vld [vmem:[#allocation5 + $0x8] sm:$0xff]  ;;  %v614_v7 = vld [vmem:[#allocation5] sm:$0xff]  ;;  %v260_v25 = vand.u32 127, %v259_v24  ;;  %s489_s8 = sshll.u32 %s789_s3, 4  ;;  %s491_s11 = sshll.u32 %s884_s4, 4  ;;  %s490_s8 = int_to_ptr.vmem [resolvable:$true] %s489_s8  ;;  %s492_s11 = int_to_ptr.hbm [resolvable:$true] %s491_s11 }
  0x12   :  { %v606_v8 = vld [vmem:[#allocation2] sm:$0xff]  ;;  %v607_v10 = vld [vmem:[#allocation2 + $0x8] sm:$0xff]  ;;  %v629_v12 = vld [vmem:[#allocation7 + $0x38] sm:$0xff]  ;;  %s790_s12 = smov 128   ;;  %s791_s13 = smov 8  }
  0x13   :  { %v610_v9 = vld [vmem:[#allocation2 + $0x20] sm:$0xff]  ;;  %v611_v11 = vld [vmem:[#allocation2 + $0x28] sm:$0xff]  ;;  %407 = vmatpush.bf16.msra.mxu1 %v629_v12  ;;  %v628_v13 = vld [vmem:[#allocation7 + $0x30] sm:$0xff]  ;;  %638 = vmatpush.bf16.msra.mxu3 %v629_v12  ;;  %vm261_vm0 = vcmp.eq.s32.totalorder %v260_v25, 32 }
  0x14   :  { %195 = vmatpush.bf16.msra.mxu0 %v620_v1  ;;  %631 = vmatpush.bf16.msra.mxu2 %v620_v1  ;;  %v627_v14 = vld [vmem:[#allocation7 + $0x28] sm:$0xff]  ;;  %v626_v15 = vld [vmem:[#allocation7 + $0x20] sm:$0xff]  ;;  %v608_v16 = vld [vmem:[#allocation2 + $0x10] sm:$0xff] }
  0x15   :  { %v612_v17 = vld [vmem:[#allocation2 + $0x30] sm:$0xff]  ;;  %v609_v18 = vld [vmem:[#allocation2 + $0x18] sm:$0xff]  ;;  %v623_v22 = vld [vmem:[#allocation7 + $0x8] sm:$0xff] }
  0x16   :  { %v613_v19 = vld [vmem:[#allocation2 + $0x38] sm:$0xff]  ;;  %v624_v21 = vld [vmem:[#allocation7 + $0x10] sm:$0xff]  ;;  %v622_v23 = vld [vmem:[#allocation7] sm:$0xff] }
  0x17   :  { %408 = vmatpush.bf16.msra.mxu1 %v628_v13  ;;  %639 = vmatpush.bf16.msra.mxu3 %v628_v13  ;;  %v625_v20 = vld [vmem:[#allocation7 + $0x18] sm:$0xff]  ;;  %vm835_vm1 = vmpackc.low %vm261_vm0, %vm261_vm0 }
  0x18   :  { %196 = vmatpush.bf16.msra.mxu0 %v619_v2  ;;  %632 = vmatpush.bf16.msra.mxu2 %v619_v2 }
  0x1b   :  { %409 = vmatpush.bf16.msra.mxu1 %v627_v14  ;;  %640 = vmatpush.bf16.msra.mxu3 %v627_v14 }
  0x1c   :  { %197 = vmatpush.bf16.msra.mxu0 %v618_v3  ;;  %633 = vmatpush.bf16.msra.mxu2 %v618_v3 }
  0x1f   :  { %410 = vmatpush.bf16.msra.mxu1 %v626_v15  ;;  %641 = vmatpush.bf16.msra.mxu3 %v626_v15 }
  0x20   :  { %198 = vmatpush.bf16.msra.mxu0 %v617_v4  ;;  %634 = vmatpush.bf16.msra.mxu2 %v617_v4 }
  0x23   :  { %411 = vmatpush.bf16.msra.mxu1 %v625_v20  ;;  %642 = vmatpush.bf16.msra.mxu3 %v625_v20 }
  0x24   :  { %199 = vmatpush.bf16.msra.mxu0 %v616_v5  ;;  %635 = vmatpush.bf16.msra.mxu2 %v616_v5 }
  0x27   :  { %412 = vmatpush.bf16.msra.mxu1 %v624_v21  ;;  %643 = vmatpush.bf16.msra.mxu3 %v624_v21 }
  0x28   :  { %200 = vmatpush.bf16.msra.mxu0 %v615_v6  ;;  %636 = vmatpush.bf16.msra.mxu2 %v615_v6 }
  0x2b   :  { %413 = vmatpush.bf16.msra.mxu1 %v623_v22  ;;  %644 = vmatpush.bf16.msra.mxu3 %v623_v22 }
  0x2c   :  { %201 = vmatpush.bf16.msra.mxu0 %v614_v7  ;;  %637 = vmatpush.bf16.msra.mxu2 %v614_v7 }
  0x2f   :  { %202 = vmatmul.bf16.vlgmr.msra.gmra.mxu0 %v606_v8  ;;  %222 = vmatmul.bf16.vlgmr.msra.gmra.mxu2 %v610_v9 }
  0x30   :  { %414 = vmatpush.bf16.msra.mxu1 %v622_v23  ;;  %645 = vmatpush.bf16.msra.mxu3 %v622_v23 }
  0x3f   :  { %207 = vmatmul.bf16.gmra.mxu0 %v607_v10  ;;  %227 = vmatmul.bf16.gmra.mxu2 %v611_v11 }
  0x4f   :  { %212 = vmatmul.bf16.gmra.mxu0 %v608_v16  ;;  %232 = vmatmul.bf16.gmra.mxu2 %v612_v17 }
  0x5f   :  { %217 = vmatmul.bf16.gmra.mxu0 %v609_v18  ;;  %237 = vmatmul.bf16.gmra.mxu2 %v613_v19 }
  0xac   :  { %v203_v26 = vpop.f32.mrf.mxu0 }
  0xad   :  { %v243_v27 = vpack.c.bf16 %v203_v26, %v203_v26 }
  0xaf   :  { %v263_v29 = vsel %vm835_vm1, 1065369472, %v243_v27 }
  0xb0   :  { %279 = vst [vmem:[#allocation8] sm:$0xf] %v263_v29  ;;  %v327_v35 = vunpack.c.l.b16 %v263_v29 }
  0xb2   :  { %v223_v30 = vpop.f32.mrf.mxu2 }
  0xb3   :  { %v251_v31 = vpack.c.bf16 %v223_v30, %v223_v30 }
  0xb4   :  { %v205_v32 = vpop.f32.mrf.mxu0 }
  0xb5   :  { %v271_v33 = vsel %vm835_vm1, 1065369472, %v251_v31  ;;  %v244_v34 = vpack.c.bf16 %v205_v32, %v205_v32 }
  0xb6   :  { %287 = vst [vmem:[#allocation8 + $0x20] sm:$0xf] %v271_v33  ;;  %v335_v44 = vunpack.c.l.b16 %v271_v33 }
  0xb7   :  { %v264_v36 = vsel %vm835_vm1, 1065369472, %v244_v34 }
  0xb8   :  { %280 = vst [vmem:[#allocation8 + $0x4] sm:$0xf] %v264_v36  ;;  %v328_v37 = vunpack.c.l.b16 %v264_v36 }
  0xba   :  { %v225_v38 = vpop.f32.mrf.mxu2  ;;  %v343_v39 = vpack.c.b16 %v328_v37, %v327_v35 }
  0xbb   :  { %v252_v40 = vpack.c.bf16 %v225_v38, %v225_v38 }
  0xbc   :  { %v208_v41 = vpop.f32.mrf.mxu0  ;;  %415 = vmatmul.bf16.vlgmr.msra.gmra.mxu1 %v343_v39 }
  0xbd   :  { %v272_v42 = vsel %vm835_vm1, 1065369472, %v252_v40  ;;  %v245_v43 = vpack.c.bf16 %v208_v41, %v208_v41 }
  0xbe   :  { %288 = vst [vmem:[#allocation8 + $0x24] sm:$0xf] %v272_v42  ;;  %v336_v45 = vunpack.c.l.b16 %v272_v42 }
  0xbf   :  { %v265_v46 = vsel %vm835_vm1, 1065369472, %v245_v43 }
  0xc0   :  { %281 = vst [vmem:[#allocation8 + $0x8] sm:$0xf] %v265_v46  ;;  %v347_v47 = vpack.c.b16 %v336_v45, %v335_v44  ;;  %v329_v53 = vunpack.c.l.b16 %v265_v46 }
  0xc2   :  { %v228_v48 = vpop.f32.mrf.mxu2  ;;  %435 = vmatmul.bf16.vlgmr.msra.gmra.mxu3 %v347_v47 }
  0xc3   :  { %v253_v49 = vpack.c.bf16 %v228_v48, %v228_v48 }
  0xc4   :  { %v210_v50 = vpop.f32.mrf.mxu0 }
  0xc5   :  { %v273_v51 = vsel %vm835_vm1, 1065369472, %v253_v49  ;;  %v246_v52 = vpack.c.bf16 %v210_v50, %v210_v50 }
  0xc6   :  { %289 = vst [vmem:[#allocation8 + $0x28] sm:$0xf] %v273_v51  ;;  %v337_v62 = vunpack.c.l.b16 %v273_v51 }
  0xc7   :  { %v266_v54 = vsel %vm835_vm1, 1065369472, %v246_v52 }
  0xc8   :  { %282 = vst [vmem:[#allocation8 + $0xc] sm:$0xf] %v266_v54  ;;  %v330_v55 = vunpack.c.l.b16 %v266_v54 }
  0xca   :  { %v230_v56 = vpop.f32.mrf.mxu2  ;;  %v344_v57 = vpack.c.b16 %v330_v55, %v329_v53 }
  0xcb   :  { %v254_v58 = vpack.c.bf16 %v230_v56, %v230_v56 }
  0xcc   :  { %v213_v59 = vpop.f32.mrf.mxu0  ;;  %420 = vmatmul.bf16.gmra.mxu1 %v344_v57 }
  0xcd   :  { %v274_v60 = vsel %vm835_vm1, 1065369472, %v254_v58  ;;  %v247_v61 = vpack.c.bf16 %v213_v59, %v213_v59 }
  0xce   :  { %290 = vst [vmem:[#allocation8 + $0x2c] sm:$0xf] %v274_v60  ;;  %v338_v63 = vunpack.c.l.b16 %v274_v60 }
  0xcf   :  { %v267_v0 = vsel %vm835_vm1, 1065369472, %v247_v61 }
  0xd0   :  { %283 = vst [vmem:[#allocation8 + $0x10] sm:$0xf] %v267_v0  ;;  %v348_v1 = vpack.c.b16 %v338_v63, %v337_v62  ;;  %v331_v7 = vunpack.c.l.b16 %v267_v0 }
  0xd2   :  { %v233_v2 = vpop.f32.mrf.mxu2  ;;  %440 = vmatmul.bf16.gmra.mxu3 %v348_v1 }
  0xd3   :  { %v255_v3 = vpack.c.bf16 %v233_v2, %v233_v2 }
  0xd4   :  { %v215_v4 = vpop.f32.mrf.mxu0 }
  0xd5   :  { %v275_v5 = vsel %vm835_vm1, 1065369472, %v255_v3  ;;  %v248_v6 = vpack.c.bf16 %v215_v4, %v215_v4 }
  0xd6   :  { %291 = vst [vmem:[#allocation8 + $0x30] sm:$0xf] %v275_v5  ;;  %v339_v16 = vunpack.c.l.b16 %v275_v5 }
  0xd7   :  { %v268_v8 = vsel %vm835_vm1, 1065369472, %v248_v6 }
  0xd8   :  { %284 = vst [vmem:[#allocation8 + $0x14] sm:$0xf] %v268_v8  ;;  %v332_v9 = vunpack.c.l.b16 %v268_v8 }
  0xda   :  { %v235_v10 = vpop.f32.mrf.mxu2  ;;  %v345_v11 = vpack.c.b16 %v332_v9, %v331_v7 }
  0xdb   :  { %v256_v12 = vpack.c.bf16 %v235_v10, %v235_v10 }
  0xdc   :  { %v218_v13 = vpop.f32.mrf.mxu0  ;;  %425 = vmatmul.bf16.gmra.mxu1 %v345_v11 }
  0xdd   :  { %v276_v14 = vsel %vm835_vm1, 1065369472, %v256_v12  ;;  %v249_v15 = vpack.c.bf16 %v218_v13, %v218_v13 }
  0xde   :  { %292 = vst [vmem:[#allocation8 + $0x34] sm:$0xf] %v276_v14  ;;  %v340_v17 = vunpack.c.l.b16 %v276_v14 }
  0xdf   :  { %v269_v18 = vsel %vm835_vm1, 1065369472, %v249_v15 }
  0xe0   :  { %285 = vst [vmem:[#allocation8 + $0x18] sm:$0xf] %v269_v18  ;;  %v349_v19 = vpack.c.b16 %v340_v17, %v339_v16  ;;  %v333_v25 = vunpack.c.l.b16 %v269_v18 }
  0xe2   :  { %v238_v20 = vpop.f32.mrf.mxu2  ;;  %445 = vmatmul.bf16.gmra.mxu3 %v349_v19 }
  0xe3   :  { %v257_v21 = vpack.c.bf16 %v238_v20, %v238_v20 }
  0xe4   :  { %v220_v22 = vpop.f32.mrf.mxu0 }
  0xe5   :  { %v277_v23 = vsel %vm835_vm1, 1065369472, %v257_v21  ;;  %v250_v24 = vpack.c.bf16 %v220_v22, %v220_v22 }
  0xe6   :  { %293 = vst [vmem:[#allocation8 + $0x38] sm:$0xf] %v277_v23  ;;  %v341_v34 = vunpack.c.l.b16 %v277_v23 }
  0xe7   :  { %v270_v26 = vsel %vm835_vm1, 1065369472, %v250_v24 }
  0xe8   :  { %286 = vst [vmem:[#allocation8 + $0x1c] sm:$0xf] %v270_v26  ;;  %v334_v27 = vunpack.c.l.b16 %v270_v26 }
  0xea   :  { %v240_v29 = vpop.f32.mrf.mxu2  ;;  %v346_v30 = vpack.c.b16 %v334_v27, %v333_v25 }
  0xeb   :  { %v258_v31 = vpack.c.bf16 %v240_v29, %v240_v29 }
  0xec   :  { %430 = vmatmul.bf16.gmra.mxu1 %v346_v30 }
  0xed   :  { %v278_v32 = vsel %vm835_vm1, 1065369472, %v258_v31 }
  0xee   :  { %294 = vst [vmem:[#allocation8 + $0x3c] sm:$0xf] %v278_v32  ;;  %v342_v33 = vunpack.c.l.b16 %v278_v32 }
  0xef   :  { %484 = dma.vmem_to_hbm [thread:$0]  %s477_s30, 1024, %s479_s7, [#allocation4], %s784_s23, %s784_s23, %s785_s24  }
  0xf0   :  { %v350_v35 = vpack.c.b16 %v342_v33, %v341_v34 }
  0xf2   :  { %450 = vmatmul.bf16.gmra.mxu3 %v350_v35 }
 0x139   :  { %v416_v36 = vpop.f32.mrf.mxu1 }
 0x13a   :  { %456 = vst [vmem:[#allocation9] sm:$0xff] %v416_v36 }
 0x141   :  { %v418_v28 = vpop.f32.mrf.mxu1 }
 0x142   :  { %457 = vst [vmem:[#allocation9 + $0x8] sm:$0xff] %v418_v28 }
 0x145   :  { %v436_v37 = vpop.f32.mrf.mxu3 }
 0x146   :  { %464 = vst [vmem:[#allocation9 + $0x40] sm:$0xff] %v436_v37 }
 0x149   :  { %v421_v38 = vpop.f32.mrf.mxu1 }
 0x14a   :  { %458 = vst [vmem:[#allocation9 + $0x10] sm:$0xff] %v421_v38 }
 0x14d   :  { %v438_v39 = vpop.f32.mrf.mxu3 }
 0x14e   :  { %465 = vst [vmem:[#allocation9 + $0x48] sm:$0xff] %v438_v39 }
 0x151   :  { %v423_v40 = vpop.f32.mrf.mxu1 }
 0x152   :  { %459 = vst [vmem:[#allocation9 + $0x18] sm:$0xff] %v423_v40 }
 0x155   :  { %v441_v41 = vpop.f32.mrf.mxu3 }
 0x156   :  { %466 = vst [vmem:[#allocation9 + $0x50] sm:$0xff] %v441_v41 }
 0x159   :  { %v426_v42 = vpop.f32.mrf.mxu1 }
 0x15a   :  { %460 = vst [vmem:[#allocation9 + $0x20] sm:$0xff] %v426_v42 }
 0x15d   :  { %v443_v43 = vpop.f32.mrf.mxu3 }
 0x15e   :  { %467 = vst [vmem:[#allocation9 + $0x58] sm:$0xff] %v443_v43 }
 0x161   :  { %v428_v44 = vpop.f32.mrf.mxu1 }
 0x162   :  { %461 = vst [vmem:[#allocation9 + $0x28] sm:$0xff] %v428_v44 }
 0x165   :  { %v446_v45 = vpop.f32.mrf.mxu3 }
 0x166   :  { %468 = vst [vmem:[#allocation9 + $0x60] sm:$0xff] %v446_v45 }
 0x169   :  { %v431_v46 = vpop.f32.mrf.mxu1 }
 0x16a   :  { %462 = vst [vmem:[#allocation9 + $0x30] sm:$0xff] %v431_v46 }
 0x16d   :  { %v448_v47 = vpop.f32.mrf.mxu3 }
 0x16e   :  { %469 = vst [vmem:[#allocation9 + $0x68] sm:$0xff] %v448_v47 }
 0x171   :  { %v433_v48 = vpop.f32.mrf.mxu1 }
 0x172   :  { %463 = vst [vmem:[#allocation9 + $0x38] sm:$0xff] %v433_v48 }
 0x175   :  { %v451_v49 = vpop.f32.mrf.mxu3 }
 0x176   :  { %470 = vst [vmem:[#allocation9 + $0x70] sm:$0xff] %v451_v49 }
 0x17d   :  { %v453_v50 = vpop.f32.mrf.mxu3 }
 0x17e   :  { %471 = vst [vmem:[#allocation9 + $0x78] sm:$0xff] %v453_v50 }
 0x17f   :  { %497 = dma.vmem_to_hbm [thread:$0]  %s490_s8, 2048, %s492_s11, [#allocation10], %s790_s12, %s790_s12, %s791_s13  }
 0x180   :  { %779 = dma.done.wait [#allocation4], 1024  }
 0x181   :  { %780 = vsyncadd [#allocation4], 4294966272 }
 0x182   :  { %781 = dma.done.wait [#allocation10], 2048  }
 0x183   :  { %782 = vsyncadd [#allocation10], 4294965248 }
 0x184   :  { %506 = vsyncpa [#allocation3], 1 }
 0x185   :  { %507 = vsyncpa [#allocation6], 1 }
 0x186   :  { %508 = vsyncpa [#allocation4], 1 }
 0x187   :  { %509 = vsyncpa [#allocation10], 1 }

</bundles_post_ra>
